<compile_context>
chip_gen: v7x
topology: tpu7x:2x2x1
jax: 0.10.0
libtpu: 0.0.40
codegen_flags: <defaults>
</compile_context>

<pallas_src>
import functools
import math

import jax
import jax.numpy as jnp
from jax.experimental import pallas as pl
from jax.experimental.pallas import tpu as pltpu


def _make_kernel(taps, G, tile_m, use_halo):
    """taps: tuple of (phase_index, q) per kernel tap; tap offset in columns = q*G."""

    def kernel(*refs):
        if use_halo:
            w_ref, scale_ref, shift_ref, x_ref, halo_ref, o_ref = refs
        else:
            w_ref, scale_ref, shift_ref, x_ref, o_ref = refs

        x = x_ref[...]                                          # (n_ph, C_in, tile_m) bf16
        if use_halo:
            # main tile + right halo -> one slab; tile_m is a multiple of 128 so
            # this is an aligned lane-axis concatenation.
            slab = jnp.concatenate([x, halo_ref[0]], axis=-1)   # (n_ph, C_in, tile_m + HW)
        else:
            slab = x

        acc = None
        for k, (ph, q) in enumerate(taps):
            off = q * G
            xk = slab[ph, :, off:off + tile_m]                  # (C_in, tile_m) bf16
            part = jnp.dot(w_ref[k], xk, preferred_element_type=jnp.float32)
            acc = part if acc is None else acc + part

        # f32 epilogue: BN scale applied here (not folded into bf16 weights).
        o_ref[...] = (acc * scale_ref[...] + shift_ref[...]).astype(o_ref.dtype)

    return kernel


def temporal_conv(x, weight, bias, gamma, beta, running_mean, running_var, *,
                  stride=1, dilation=1, eps=1e-5, tile_m=2048,
                  out_dtype=jnp.float32):
    """x: (N, C_in, T, V) f32; weight: (C_out, C_in, K, 1); returns (N, C_out, T_out, V)."""
    N, C_in, T, V = x.shape
    C_out, C_in_w, K, kw = weight.shape
    assert C_in_w == C_in and kw == 1
    s, d = int(stride), int(dilation)

    pad = ((K - 1) * d) // 2
    T_out = (T + 2 * pad - d * (K - 1) - 1) // s + 1
    G = N * V                       # fast (lane) group per output time step
    M = T_out * G                   # flat output columns, ordered (t_out, n, v)

    # ---- polyphase decomposition of the K taps: input_time = (t_out + q_k)*s + p_k ----
    phase_of_k = [(k * d) % s for k in range(K)]
    q_of_k = [(k * d) // s for k in range(K)]
    phases_used = sorted(set(phase_of_k))
    ph_remap = {p: i for i, p in enumerate(phases_used)}
    taps = tuple((ph_remap[phase_of_k[k]], q_of_k[k]) for k in range(K))
    n_ph = len(phases_used)
    q_max = max(q_of_k)
    HW = q_max * G                  # halo width (columns) needed past each main tile
    use_halo = HW > 0

    out_bytes = jnp.dtype(out_dtype).itemsize

    # ---- per-chip VMEM budget (v7x: 64 MiB physical -> ~38 MiB; v5e/v6e: ~76 MiB) ----
    try:
        cap = int(getattr(pltpu.get_tpu_info(), "vmem_capacity_bytes", 64 << 20))
    except Exception:
        cap = 64 << 20
    budget = int(cap * 0.6)

    def ws_bytes(tm):
        return (2 * (n_ph * C_in * tm * 2            # x block (double-buffered, bf16)
                     + n_ph * C_in * HW * 2          # halo block
                     + C_out * tm * out_bytes        # out block
                     + K * C_out * C_in * 2          # resident weights
                     + 2 * C_out * 4)                # scale + shift
                + n_ph * C_in * (tm + HW) * 2        # in-kernel slab
                + C_out * tm * 4                     # f32 accumulator
                + 2 * C_in * tm * 2)                 # per-tap staging

    def _dn128(v):
        return max(128, (v // 128) * 128)

    def _up128(v):
        return ((v + 127) // 128) * 128

    tm = _dn128(int(tile_m))
    if use_halo:                                     # keep halo replication small vs tile
        tm = max(tm, min(_up128(4 * HW), 8192))
    tm = min(tm, _up128(M))
    while tm > 128 and ws_bytes(tm) > budget:        # shrink only if VMEM budget binds
        tm = _dn128(tm // 2)
    while tm > 512 and pl.cdiv(M, tm) < 4:           # prefer >=2 steps per TC on v7x
        tm = _dn128(tm // 2)

    num_m = pl.cdiv(M, tm)
    M_pad = num_m * tm

    # ---- build x_flat: (n_ph, C_in, U_tot*G); flat column f = t_out*G + (n*V + v) ----
    # Exactly ONE pass over the un-replicated input (cast + pad + transpose).
    U_tot = -(-(M_pad + HW) // G)                    # ceil((M_pad + HW) / G)
    T_time = U_tot * s
    xb = x.astype(jnp.bfloat16)
    back = T_time - T - pad
    xb = jnp.pad(xb, ((0, 0), (0, 0), (pad, max(back, 0)), (0, 0)))[:, :, :T_time, :]
    xt = jnp.transpose(xb, (1, 2, 0, 3)).reshape(C_in, U_tot, s, G)   # time = u*s + p
    if n_ph < s:                                     # drop phases no tap ever reads
        xt = jnp.take(xt, jnp.asarray(phases_used, dtype=jnp.int32), axis=2)
    x_flat = jnp.transpose(xt, (2, 0, 1, 3)).reshape(n_ph, C_in, U_tot * G)

    # ---- fold conv bias + eval-mode BN; scale stays in the f32 epilogue ----
    w_eff = jnp.transpose(weight[:, :, :, 0], (2, 0, 1)).astype(jnp.bfloat16)   # (K, C_out, C_in)
    inv_std = 1.0 / jnp.sqrt(running_var.astype(jnp.float32) + eps)
    scale = (gamma.astype(jnp.float32) * inv_std).reshape(C_out, 1)
    shift = (beta.astype(jnp.float32)
             + scale[:, 0] * (bias.astype(jnp.float32) - running_mean.astype(jnp.float32))
             ).reshape(C_out, 1)

    inputs = [w_eff, scale, shift, x_flat]
    in_specs = [
        pl.BlockSpec((K, C_out, C_in), lambda m: (0, 0, 0)),     # resident weights
        pl.BlockSpec((C_out, 1), lambda m: (0, 0)),              # resident BN scale
        pl.BlockSpec((C_out, 1), lambda m: (0, 0)),              # resident bias/BN shift
        pl.BlockSpec((n_ph, C_in, tm), lambda m: (0, 0, m)),     # main x tile (read once)
    ]

    if use_halo:
        # tiny per-tile right-halo (q_max*G columns after each main tile), gathered once.
        starts = (jnp.arange(num_m, dtype=jnp.int32) + 1) * tm
        cols = (starts[:, None] + jnp.arange(HW, dtype=jnp.int32)[None, :]).reshape(-1)
        halo = jnp.take(x_flat, cols, axis=2).reshape(n_ph, C_in, num_m, HW)
        halo = jnp.transpose(halo, (2, 0, 1, 3))                 # (num_m, n_ph, C_in, HW)
        inputs.append(halo)
        in_specs.append(pl.BlockSpec((1, n_ph, C_in, HW), lambda m: (m, 0, 0, 0)))

    kernel = _make_kernel(taps, G, tm, use_halo)
    semantics = ("parallel",) if num_m >= 4 else ("arbitrary",)
    vmem_limit = int(min(max(int(1.5 * ws_bytes(tm)), 32 << 20), cap - (4 << 20)))

    out = pl.pallas_call(
        kernel,
        out_shape=jax.ShapeDtypeStruct((C_out, M_pad), out_dtype),
        grid_spec=pltpu.PrefetchScalarGridSpec(
            num_scalar_prefetch=0,
            grid=(num_m,),
            in_specs=in_specs,
            out_specs=pl.BlockSpec((C_out, tm), lambda m: (0, m)),
        ),
        compiler_params=pltpu.CompilerParams(
            dimension_semantics=semantics,
            vmem_limit_bytes=vmem_limit),
    )(*inputs)

    out = out[:, :M].reshape(C_out, T_out, N, V)
    # TODO(synk): this transpose is one extra HBM pass; fuse into the consumer if possible.
    return jnp.transpose(out, (2, 0, 1, 3)).astype(out_dtype)    # (N, C_out, T_out, V)


def ref_temporal_conv(x, weight, bias, gamma, beta, rm, rv, stride, dilation, eps=1e-5):
    """Plain-JAX reference mirroring the PyTorch forward (eval-mode BN)."""
    K = weight.shape[2]
    pad = (K + (K - 1) * (dilation - 1) - 1) // 2
    y = jax.lax.conv_general_dilated(
        x, weight, window_strides=(stride, 1),
        padding=((pad, pad), (0, 0)),
        rhs_dilation=(dilation, 1),
        dimension_numbers=("NCHW", "OIHW", "NCHW"))
    y = y + bias[None, :, None, None]
    scale = gamma / jnp.sqrt(rv + eps)
    return scale[None, :, None, None] * (y - rm[None, :, None, None]) + beta[None, :, None, None]


if __name__ == "__main__":
    key = jax.random.PRNGKey(0)
    # Small shapes; T chosen so the grid has several tiles (exercises the halo path).
    N, C_in, C_out, T, V, K = 2, 8, 8, 80, 16, 5

    k_x, k_w, k_b, k_g, k_be, k_rm, k_rv = jax.random.split(key, 7)
    x = jax.random.normal(k_x, (N, C_in, T, V), dtype=jnp.float32)
    fan_in = C_in * K
    bound = 1.0 / (fan_in ** 0.5)
    weight = jax.random.uniform(k_w, (C_out, C_in, K, 1), jnp.float32, -bound, bound)
    bias = jax.random.uniform(k_b, (C_out,), jnp.float32, -bound, bound)
    gamma = 1.0 + 0.1 * jax.random.normal(k_g, (C_out,), jnp.float32)
    beta = 0.1 * jax.random.normal(k_be, (C_out,), jnp.float32)
    running_mean = 0.1 * jax.random.normal(k_rm, (C_out,), jnp.float32)
    running_var = 1.0 + 0.1 * jnp.abs(jax.random.normal(k_rv, (C_out,), jnp.float32))

    ok = True
    for stride, dilation in [(1, 1), (2, 1), (2, 2)]:
        # tile_m=512 at these tiny shapes so num_m > 1 and the halo / polyphase
        # paths are genuinely exercised; production default is 2048.
        fn = jax.jit(functools.partial(temporal_conv, stride=stride,
                                       dilation=dilation, tile_m=512))
        y = jax.block_until_ready(
            fn(x, weight, bias, gamma, beta, running_mean, running_var))
        y_ref = jax.block_until_ready(
            ref_temporal_conv(x, weight, bias, gamma, beta, running_mean,
                              running_var, stride, dilation))
        # bf16 operands with f32 accumulation -> slightly relaxed tolerance
        if y.shape != y_ref.shape or not bool(jnp.allclose(y, y_ref, atol=2e-2, rtol=2e-2)):
            ok = False

    if ok:
        print("KERNEL_OK")
    else:
        print("KERNEL_MISMATCH")
</pallas_src>

<mosaic_0001>
module attributes {stable_mosaic.version = 11 : i64} {
  func.func @kernel(%arg0: i32, %arg1: memref<5x8x8xbf16, #tpu.memory_space<vmem>>, %arg2: memref<8x1xf32, #tpu.memory_space<vmem>>, %arg3: memref<8x1xf32, #tpu.memory_space<vmem>>, %arg4: memref<1x8x512xbf16, #tpu.memory_space<vmem>>, %arg5: memref<1x1x8x128xbf16, #tpu.memory_space<vmem>>, %arg6: memref<8x512xf32, #tpu.memory_space<vmem>>) attributes {dimension_semantics = [#tpu.dimension_semantics<parallel>], iteration_bounds = array<i64: 5>, scalar_prefetch = 0 : i64, scratch_operands = 0 : i64, tpu.core_type = #tpu.core_type<tc>, window_params = [{pipeline_mode = #tpu.pipeline_mode<synchronous>, transform_indices = @transform_0, window_bounds = array<i64: 5, 8, 8>}, {pipeline_mode = #tpu.pipeline_mode<synchronous>, transform_indices = @transform_1, window_bounds = array<i64: 8, 1>}, {pipeline_mode = #tpu.pipeline_mode<synchronous>, transform_indices = @transform_2, window_bounds = array<i64: 8, 1>}, {transform_indices = @transform_3, window_bounds = array<i64: 1, 8, 512>}, {transform_indices = @transform_4, window_bounds = array<i64: 1, 1, 8, 128>}, {transform_indices = @transform_5, window_bounds = array<i64: 8, 512>}]} {
    %c0 = arith.constant 0 : index
    %c0_0 = arith.constant 0 : index
    %c0_1 = arith.constant 0 : index
    %0 = vector.load %arg4[%c0, %c0_0, %c0_1] : memref<1x8x512xbf16, #tpu.memory_space<vmem>>, vector<1x8x512xbf16>
    %c0_2 = arith.constant 0 : index
    %c0_3 = arith.constant 0 : index
    %c0_4 = arith.constant 0 : index
    %c0_5 = arith.constant 0 : index
    %1 = vector.load %arg5[%c0_2, %c0_3, %c0_4, %c0_5] : memref<1x1x8x128xbf16, #tpu.memory_space<vmem>>, vector<1x1x8x128xbf16>
    %2 = vector.shape_cast %1 : vector<1x1x8x128xbf16> to vector<1x8x128xbf16>
    %3 = tpu.concatenate %0, %2 in 2 : vector<1x8x512xbf16>, vector<1x8x128xbf16> -> vector<1x8x640xbf16>
    %4 = vector.extract_strided_slice %3 {offsets = [0, 0, 0], sizes = [1, 8, 512], strides = [1, 1, 1]} : vector<1x8x640xbf16> to vector<1x8x512xbf16>
    %5 = vector.shape_cast %4 : vector<1x8x512xbf16> to vector<8x512xbf16>
    %c0_6 = arith.constant 0 : index
    %c0_7 = arith.constant 0 : index
    %c0_8 = arith.constant 0 : index
    %6 = vector.load %arg1[%c0_6, %c0_7, %c0_8] : memref<5x8x8xbf16, #tpu.memory_space<vmem>>, vector<1x8x8xbf16>
    %7 = vector.shape_cast %6 : vector<1x8x8xbf16> to vector<8x8xbf16>
    %cst = arith.constant dense<0.000000e+00> : vector<8x512xf32>
    %8 = tpu.matmul %7, %5, %cst {dimension_numbers = #tpu.dot_dimension_numbers<[1], [0], [0], [1], [0, 0, 1, 1], [], []>} : vector<8x8xbf16>, vector<8x512xbf16>, vector<8x512xf32> -> vector<8x512xf32>
    %9 = vector.extract_strided_slice %3 {offsets = [0, 0, 32], sizes = [1, 8, 512], strides = [1, 1, 1]} : vector<1x8x640xbf16> to vector<1x8x512xbf16>
    %10 = vector.shape_cast %9 : vector<1x8x512xbf16> to vector<8x512xbf16>
    %c1 = arith.constant 1 : index
    %c0_9 = arith.constant 0 : index
    %c0_10 = arith.constant 0 : index
    %11 = vector.load %arg1[%c1, %c0_9, %c0_10] : memref<5x8x8xbf16, #tpu.memory_space<vmem>>, vector<1x8x8xbf16>
    %12 = vector.shape_cast %11 : vector<1x8x8xbf16> to vector<8x8xbf16>
    %cst_11 = arith.constant dense<0.000000e+00> : vector<8x512xf32>
    %13 = tpu.matmul %12, %10, %cst_11 {dimension_numbers = #tpu.dot_dimension_numbers<[1], [0], [0], [1], [0, 0, 1, 1], [], []>} : vector<8x8xbf16>, vector<8x512xbf16>, vector<8x512xf32> -> vector<8x512xf32>
    %14 = arith.addf %8, %13 : vector<8x512xf32>
    %15 = vector.extract_strided_slice %3 {offsets = [0, 0, 64], sizes = [1, 8, 512], strides = [1, 1, 1]} : vector<1x8x640xbf16> to vector<1x8x512xbf16>
    %16 = vector.shape_cast %15 : vector<1x8x512xbf16> to vector<8x512xbf16>
    %c2 = arith.constant 2 : index
    %c0_12 = arith.constant 0 : index
    %c0_13 = arith.constant 0 : index
    %17 = vector.load %arg1[%c2, %c0_12, %c0_13] : memref<5x8x8xbf16, #tpu.memory_space<vmem>>, vector<1x8x8xbf16>
    %18 = vector.shape_cast %17 : vector<1x8x8xbf16> to vector<8x8xbf16>
    %cst_14 = arith.constant dense<0.000000e+00> : vector<8x512xf32>
    %19 = tpu.matmul %18, %16, %cst_14 {dimension_numbers = #tpu.dot_dimension_numbers<[1], [0], [0], [1], [0, 0, 1, 1], [], []>} : vector<8x8xbf16>, vector<8x512xbf16>, vector<8x512xf32> -> vector<8x512xf32>
    %20 = arith.addf %14, %19 : vector<8x512xf32>
    %21 = vector.extract_strided_slice %3 {offsets = [0, 0, 96], sizes = [1, 8, 512], strides = [1, 1, 1]} : vector<1x8x640xbf16> to vector<1x8x512xbf16>
    %22 = vector.shape_cast %21 : vector<1x8x512xbf16> to vector<8x512xbf16>
    %c3 = arith.constant 3 : index
    %c0_15 = arith.constant 0 : index
    %c0_16 = arith.constant 0 : index
    %23 = vector.load %arg1[%c3, %c0_15, %c0_16] : memref<5x8x8xbf16, #tpu.memory_space<vmem>>, vector<1x8x8xbf16>
    %24 = vector.shape_cast %23 : vector<1x8x8xbf16> to vector<8x8xbf16>
    %cst_17 = arith.constant dense<0.000000e+00> : vector<8x512xf32>
    %25 = tpu.matmul %24, %22, %cst_17 {dimension_numbers = #tpu.dot_dimension_numbers<[1], [0], [0], [1], [0, 0, 1, 1], [], []>} : vector<8x8xbf16>, vector<8x512xbf16>, vector<8x512xf32> -> vector<8x512xf32>
    %26 = arith.addf %20, %25 : vector<8x512xf32>
    %27 = vector.extract_strided_slice %3 {offsets = [0, 0, 128], sizes = [1, 8, 512], strides = [1, 1, 1]} : vector<1x8x640xbf16> to vector<1x8x512xbf16>
    %28 = vector.shape_cast %27 : vector<1x8x512xbf16> to vector<8x512xbf16>
    %c4 = arith.constant 4 : index
    %c0_18 = arith.constant 0 : index
    %c0_19 = arith.constant 0 : index
    %29 = vector.load %arg1[%c4, %c0_18, %c0_19] : memref<5x8x8xbf16, #tpu.memory_space<vmem>>, vector<1x8x8xbf16>
    %30 = vector.shape_cast %29 : vector<1x8x8xbf16> to vector<8x8xbf16>
    %cst_20 = arith.constant dense<0.000000e+00> : vector<8x512xf32>
    %31 = tpu.matmul %30, %28, %cst_20 {dimension_numbers = #tpu.dot_dimension_numbers<[1], [0], [0], [1], [0, 0, 1, 1], [], []>} : vector<8x8xbf16>, vector<8x512xbf16>, vector<8x512xf32> -> vector<8x512xf32>
    %32 = arith.addf %26, %31 : vector<8x512xf32>
    %c0_21 = arith.constant 0 : index
    %c0_22 = arith.constant 0 : index
    %33 = vector.load %arg2[%c0_21, %c0_22] : memref<8x1xf32, #tpu.memory_space<vmem>>, vector<8x1xf32>
    %34 = vector.broadcast %33 : vector<8x1xf32> to vector<8x512xf32>
    %35 = arith.mulf %32, %34 : vector<8x512xf32>
    %c0_23 = arith.constant 0 : index
    %c0_24 = arith.constant 0 : index
    %36 = vector.load %arg3[%c0_23, %c0_24] : memref<8x1xf32, #tpu.memory_space<vmem>>, vector<8x1xf32>
    %37 = vector.broadcast %36 : vector<8x1xf32> to vector<8x512xf32>
    %38 = arith.addf %35, %37 : vector<8x512xf32>
    %c0_25 = arith.constant 0 : index
    %c0_26 = arith.constant 0 : index
    %39 = vector.load %arg6[%c0_25, %c0_26] : memref<8x512xf32, #tpu.memory_space<vmem>>, vector<8x512xf32>
    tpu.vector_store %arg6[%c0_25, %c0_26], %38 {strides = array<i32>} : memref<8x512xf32, #tpu.memory_space<vmem>>, vector<8x512xf32>,
    return
  }
  func.func @transform_0(%arg0: i32) -> (i32, i32, i32) {
    %c0_i32 = arith.constant 0 : i32
    %c0_i32_0 = arith.constant 0 : i32
    %c0_i32_1 = arith.constant 0 : i32
    %c0_i32_2 = arith.constant 0 : i32
    return %c0_i32, %c0_i32_0, %c0_i32_1 : i32, i32, i32
  }
  func.func @transform_1(%arg0: i32) -> (i32, i32) {
    %c0_i32 = arith.constant 0 : i32
    %c0_i32_0 = arith.constant 0 : i32
    %c0_i32_1 = arith.constant 0 : i32
    return %c0_i32, %c0_i32_0 : i32, i32
  }
  func.func @transform_2(%arg0: i32) -> (i32, i32) {
    %c0_i32 = arith.constant 0 : i32
    %c0_i32_0 = arith.constant 0 : i32
    %c0_i32_1 = arith.constant 0 : i32
    return %c0_i32, %c0_i32_0 : i32, i32
  }
  func.func @transform_3(%arg0: i32) -> (i32, i32, i32) {
    %c0_i32 = arith.constant 0 : i32
    %c0_i32_0 = arith.constant 0 : i32
    %c0_i32_1 = arith.constant 0 : i32
    return %c0_i32, %c0_i32_0, %arg0 : i32, i32, i32
  }
  func.func @transform_4(%arg0: i32) -> (i32, i32, i32, i32) {
    %c0_i32 = arith.constant 0 : i32
    %c0_i32_0 = arith.constant 0 : i32
    %c0_i32_1 = arith.constant 0 : i32
    %c0_i32_2 = arith.constant 0 : i32
    return %arg0, %c0_i32, %c0_i32_0, %c0_i32_1 : i32, i32, i32, i32
  }
  func.func @transform_5(%arg0: i32) -> (i32, i32) {
    %c0_i32 = arith.constant 0 : i32
    %c0_i32_0 = arith.constant 0 : i32
    return %c0_i32, %arg0 : i32, i32
  }
}

</mosaic_0001>

<bundles_post_ra>
// kernel: temporal_conv.1
= control target key start
LH: loop header
LB: loop body
LE: loop exit
PB: predicated region body
PF: predicated region fallthrough
CT: control target
= control target key end

     0   :  { %s1048_s18 = smov 0   ;;  %s1176_s0 = inlined_call_operand.vmem [shape: bf16[5,8,8], index: 0, kind: input, shape index: {}]   ;;  %s1177_s1 = inlined_call_operand.vmem [shape: f32[8,1], index: 1, kind: input, shape index: {}]   ;;  %s1178_s2 = inlined_call_operand.vmem [shape: f32[8,1], index: 2, kind: input, shape index: {}]   ;;  %s1179_s3 = inlined_call_operand.vmem [shape: bf16[1,8,2688], index: 3, kind: input, shape index: {}]   ;;  %s1180_s4 = inlined_call_operand.vmem [shape: bf16[5,1,8,128], index: 4, kind: input, shape index: {}]   ;;  %s1181_s5 = inlined_call_operand.vmem [shape: f32[8,2560], index: 5, kind: output, shape index: {}]  }
   0x1 LB: > { %s916_s19 = sadd.s32 4294967295, %s1012_s18   ;;  %p920_p0 = scmp.ge.s32.totalorder %s1012_s18, 1  ;;  %s1012_s18 = sphi %s1048_s18, %s15_s18  }
   0x2   : > { %p205_p1 = scmp.lt.s32.totalorder %s1012_s18, 6 }
   0x4   : > { %p206_p2 = pnand %p920_p0, %p205_p1 }
   0x5   : > { %s1056_s20 = sshll.u32 (!%p206_p2), %s916_s19, 2  ;;  %p255_p4 = scmp.lt.s32.totalorder (!%p206_p2), %s916_s19, 4  ;;  %v1014_v0 = vmov (!%p206_p2), 0   ;;  %v824_v8 = vld [vmem:[%s1177_s1] sm:$0xff] (!%p206_p2)  ;;  %vm293_vm0 = vcmask (!%p206_p2), 785408   ;;  %vm302_vm1 = vcmask (!%p206_p2), 1043456  }
   0x6   : > { %209 = sbr.rel (%p206_p2) target bundleno = 414 (0x19e), region = 40  ;;  %p246_p3 = scmp.lt.s32.totalorder (!%p206_p2), %s1056_s20, 20  ;;  %347 = vmatprep.mubr.bf16.mxu0 (!%p206_p2), %v1014_v0  ;;  %388 = vmatprep.mubr.bf16.mxu1 (!%p206_p2), %v1014_v0  ;;  %v834_v9 = vld [vmem:[%s1178_s2] sm:$0xff] (!%p206_p2)  ;;  %vm298_vm2 = vcmask (!%p206_p2), 64512   ;;  %vm506_vm3 = vcmask (!%p206_p2), 523264   ;;  %vm624_vm4 = vcmask (!%p206_p2), 261120  }
   0x7   : > { %1000 = vset.pattern.permute.xlu1 (!%p206_p2), %v1014_v0  ;;  %1001 = vset.pattern.permute.xlu0 (!%p206_p2), %v1014_v0  ;;  %s1015_s27 = smov (!%p206_p2), 96   ;;  %s1016_s6 = smov (!%p206_p2), 64   ;;  %v930_v17 = vld [vmem:[%s1176_s0 + $0x4] sm:$0xf] (!%p206_p2)  ;;  %v279_v32 = vld [vmem:[%s1176_s0] sm:$0xf] (!%p206_p2) }
   0x8   : > { %s1017_s7 = smov (!%p206_p2), 32   ;;  %v939_v44 = vld [vmem:[%s1176_s0 + $0x8] sm:$0xf] (!%p206_p2)  ;;  %v944_v48 = vld [vmem:[%s1176_s0 + $0xc] sm:$0xf] (!%p206_p2)  ;;  %p260_p5 = scmp.lt.s32.totalorder (!%p206_p2), %s1056_s20, 19 }
   0x9   : > { %v949_v51 = vld [vmem:[%s1176_s0 + $0x10] sm:$0xf] (!%p206_p2) }
   0xd   : > { %s247_s21 = scalar_select %p246_p3, %s1056_s20, 20 }
   0xe   : > { %s1183_s19 = smov (!%p255_p4, %s916_s19), 4  ;;  %s1185_s20 = smov (!%p260_p5, %s1056_s20), 19 }
   0xf   : > { %s922_s22 = sshll.u32 %s247_s21, 2  ;;  %s923_s26 = sshll.u32 %s1183_s19, 2 }
  0x10   : > { %s249_s25 = scalar_lea.vmem %s1179_s3, %s922_s22  ;;  %s258_s30 = scalar_lea.vmem %s1180_s4, %s923_s26 }
  0x11   : > { %v267_v1 = vld [vmem:[%s249_s25 + $0x8] sm:$0xff]  ;;  %v266_v2 = vld [vmem:[%s249_s25] sm:$0xff]  ;;  %s925_s24 = sshll.u32 %s1185_s20, 3 }
  0x12   : > { %v1067_v3 = vcombine.low %v267_v1, %v267_v1  ;;  %v926_v4 = vcombine.low %v266_v2, %v266_v2  ;;  %v1070_v5 = vcombine.high %v266_v2, %v266_v2  ;;  %v1072_v6 = vcombine.high %v267_v1, %v267_v1  ;;  %v1079_v7 = vld [vmem:[%s258_s30] sm:$0xf] }
  0x14   : > { %287 = vrot.lane.b32.xlu1 %v1067_v3, %s1015_s27  ;;  %283 = vrot.lane.b32.xlu0 %v926_v4, %s1015_s27  ;;  %v401_v21 = vsel %vm302_vm1, %v926_v4, 0  ;;  %v407_v24 = vsel %vm302_vm1, %v1067_v3, 0  ;;  %v404_v49 = vsel %vm302_vm1, %v1070_v5, 0  ;;  %v410_v50 = vsel %vm302_vm1, %v1072_v6, 0 }
  0x18   : > { %289 = vrot.lane.b32.xlu1 %v1072_v6, %s1015_s27  ;;  %285 = vrot.lane.b32.xlu0 %v1070_v5, %s1015_s27 }
  0x1c   : > { %291 = vrot.lane.b32.xlu0 %v1079_v7, %s1015_s27  ;;  %496 = vrot.lane.b32.xlu1 %v926_v4, %s1016_s6  ;;  %s263_s27 = scalar_lea.vmem %s1181_s5, %s925_s24 }
  0x20   : > { %498 = vrot.lane.b32.xlu0 %v1070_v5, %s1016_s6  ;;  %500 = vrot.lane.b32.xlu1 %v1067_v3, %s1016_s6 }
  0x24   : > { %502 = vrot.lane.b32.xlu0 %v1072_v6, %s1016_s6  ;;  %504 = vrot.lane.b32.xlu1 %v1079_v7, %s1016_s6 }
  0x28   : > { %614 = vrot.lane.b32.xlu0 %v926_v4, %s1017_s7  ;;  %616 = vrot.lane.b32.xlu1 %v1070_v5, %s1017_s7 }
  0x2c   : > { %618 = vrot.lane.b32.xlu0 %v1067_v3, %s1017_s7  ;;  %620 = vrot.lane.b32.xlu1 %v1072_v6, %s1017_s7 }
  0x30   : > { %622 = vrot.lane.b32.xlu0 %v1079_v7, %s1017_s7  ;;  %827 = vperm.xlu1 %1000, %v824_v8  }
  0x34   : > { %837 = vperm.xlu0 %1001, %v834_v9  }
  0x86   : > { %v288_v10 = vpop.permute.xlu1 %287  ;;  %v284_v11 = vpop.permute.xlu0 %283 }
  0x8a   : > { %v290_v12 = vpop.permute.xlu1 %289  ;;  %v286_v13 = vpop.permute.xlu0 %285 }
  0x8b   : > { %v295_v14 = vsel %vm293_vm0, %v286_v13, %v288_v10  ;;  %v294_v15 = vsel %vm293_vm0, %v284_v11, %v286_v13  ;;  %v296_v18 = vsel %vm293_vm0, %v288_v10, %v290_v12 }
  0x8c   : > { %931 = vmatprep.subr.msk.bf16.mxu0 %vm302_vm1, %v295_v14  ;;  %v304_v16 = vsel %vm302_vm1, %v294_v15, 0  ;;  %v310_v23 = vsel %vm302_vm1, %v296_v18, 0 }
  0x8d   : > { %316 = vmatpush1.bf16.msra.mxu0 %v304_v16 }
  0x8e   : > { %v292_v19 = vpop.permute.xlu0 %291  ;;  %935 = vmatprep.subr.msk.bf16.mxu0 %vm302_vm1, %v1070_v5  ;;  %v497_v20 = vpop.permute.xlu1 %496 }
  0x8f   : > { %v297_v22 = vsel %vm293_vm0, %v290_v12, %v292_v19 }
  0x90   : > { %932 = vmatmul.mubr.msk.bf16.vlgmr.msra.gmra.mrb[0].mxu0 %vm298_vm2, %v930_v17  ;;  %933 = vmatprep.subr.msk.bf16.mxu1 %vm302_vm1, %v297_v22 }
  0x91   : > { %357 = vmatpush1.bf16.msra.mxu1 %v310_v23  ;;  %413 = vmatpush1.bf16.msra.mxu0 %v401_v21 }
  0x92   : > { %937 = vmatprep.subr.msk.bf16.mxu1 %vm302_vm1, %v1072_v6  ;;  %v499_v25 = vpop.permute.xlu0 %498  ;;  %v501_v26 = vpop.permute.xlu1 %500  ;;  %444 = vmatprep.mubr.bf16.mxu0 %v1014_v0 }
  0x93   : > { %v508_v27 = vsel %vm506_vm3, %v499_v25, %v501_v26  ;;  %v507_v30 = vsel %vm506_vm3, %v497_v20, %v499_v25 }
  0x94   : > { %934 = vmatmul.mubr.msk.bf16.vlgmr.msra.gmra.mrb[0].mxu1 %vm298_vm2, %v930_v17  ;;  %940 = vmatprep.subr.msk.bf16.mxu0 %vm302_vm1, %v508_v27  ;;  %v515_v33 = vsel %vm302_vm1, %v507_v30, 0 }
  0x95   : > { %454 = vmatpush1.bf16.msra.mxu1 %v407_v24  ;;  %485 = vmatprep.mubr.bf16.mxu1 %v1014_v0 }
  0x96   : > { %v503_v28 = vpop.permute.xlu0 %502  ;;  %v505_v29 = vpop.permute.xlu1 %504 }
  0x97   : > { %v510_v31 = vsel %vm506_vm3, %v503_v28, %v505_v29  ;;  %v509_v36 = vsel %vm506_vm3, %v501_v26, %v503_v28 }
  0x98   : > { %942 = vmatprep.subr.msk.bf16.mxu1 %vm302_vm1, %v510_v31  ;;  %v521_v37 = vsel %vm302_vm1, %v509_v36, 0 }
  0x9a   : > { %v615_v34 = vpop.permute.xlu0 %614  ;;  %v617_v35 = vpop.permute.xlu1 %616 }
  0x9b   : > { %v625_v42 = vsel %vm624_vm4, %v615_v34, %v617_v35 }
  0x9c   : > { %936 = vmatmul.mubr.msk.bf16.vlgmr.msra.gmra.mrb[0].mxu0 %vm298_vm2, %v279_v32  ;;  %v633_v45 = vsel %vm302_vm1, %v625_v42, 0 }
  0x9d   : > { %527 = vmatpush1.bf16.msra.mxu0 %v515_v33  ;;  %558 = vmatprep.mubr.bf16.mxu0 %v1014_v0 }
  0x9e   : > { %v619_v38 = vpop.permute.xlu0 %618  ;;  %v621_v40 = vpop.permute.xlu1 %620 }
  0x9f   : > { %v626_v39 = vsel %vm624_vm4, %v617_v35, %v619_v38  ;;  %v627_v46 = vsel %vm624_vm4, %v619_v38, %v621_v40 }
  0xa0   : > { %938 = vmatmul.mubr.msk.bf16.vlgmr.msra.gmra.mrb[0].mxu1 %vm298_vm2, %v279_v32  ;;  %945 = vmatprep.subr.msk.bf16.mxu0 %vm302_vm1, %v626_v39  ;;  %v639_v47 = vsel %vm302_vm1, %v627_v46, 0 }
  0xa1   : > { %568 = vmatpush1.bf16.msra.mxu1 %v521_v37  ;;  %599 = vmatprep.mubr.bf16.mxu1 %v1014_v0 }
  0xa2   : > { %v623_v41 = vpop.permute.xlu0 %622 }
  0xa3   : > { %v628_v43 = vsel %vm624_vm4, %v621_v40, %v623_v41 }
  0xa4   : > { %947 = vmatprep.subr.msk.bf16.mxu1 %vm302_vm1, %v628_v43 }
  0xa8   : > { %941 = vmatmul.mubr.msk.bf16.vlgmr.msra.gmra.mrb[0].mxu0 %vm298_vm2, %v939_v44 }
  0xa9   : > { %645 = vmatpush1.bf16.msra.mxu0 %v633_v45  ;;  %676 = vmatprep.mubr.bf16.mxu0 %v1014_v0 }
  0xaa   : > { %950 = vmatprep.subr.msk.bf16.mxu0 %vm302_vm1, %v1067_v3 }
  0xac   : > { %943 = vmatmul.mubr.msk.bf16.vlgmr.msra.gmra.mrb[0].mxu1 %vm298_vm2, %v939_v44 }
  0xad   : > { %686 = vmatpush1.bf16.msra.mxu1 %v639_v47  ;;  %717 = vmatprep.mubr.bf16.mxu1 %v1014_v0 }
  0xae   : > { %952 = vmatprep.subr.msk.bf16.mxu1 %vm302_vm1, %v1079_v7 }
  0xaf   : > { %v828_v52 = vpop.permute.xlu1 %827 }
  0xb3   : > { %v838_v54 = vpop.permute.xlu0 %837 }
  0xb4   : > { %946 = vmatmul.mubr.msk.bf16.vlgmr.msra.gmra.mrb[0].mxu0 %vm298_vm2, %v944_v48 }
  0xb5   : > { %739 = vmatpush1.bf16.msra.mxu0 %v404_v49  ;;  %770 = vmatprep.mubr.bf16.mxu0 %v1014_v0 }
  0xb8   : > { %948 = vmatmul.mubr.msk.bf16.vlgmr.msra.gmra.mrb[0].mxu1 %vm298_vm2, %v944_v48 }
  0xb9   : > { %780 = vmatpush1.bf16.msra.mxu1 %v410_v50  ;;  %811 = vmatprep.mubr.bf16.mxu1 %v1014_v0 }
  0xc0   : > { %951 = vmatmul.mubr.msk.bf16.vlgmr.msra.gmra.mrb[0].mxu0 %vm298_vm2, %v949_v51 }
  0xc4   : > { %953 = vmatmul.mubr.msk.bf16.vlgmr.msra.gmra.mrb[0].mxu1 %vm298_vm2, %v949_v51 }
 0x193   : > { %v772_v53 = vpop.f32.mrb[0].mxu0 }
 0x194   : > { %v830_v55 = vmul.f32 %v828_v52, %v772_v53  ;;  %v774_v56 = vpop.f32.mrb[1].mxu0 }
 0x195   : > { %v831_v57 = vmul.f32 %v828_v52, %v774_v56  ;;  %v776_v58 = vpop.f32.mrb[2].mxu0 }
 0x196   : > { %v840_v59 = vadd.f32 %v838_v54, %v830_v55  ;;  %v777_v60 = vpop.f32.mrb[3].mxu0 }
 0x197   : > { %v841_v61 = vadd.f32 %v838_v54, %v831_v57  ;;  %v813_v62 = vpop.f32.mrb[0].mxu1 }
 0x198   : > { %844 = vst [vmem:[%s263_s27] sm:$0xff] %v840_v59  ;;  %v832_v63 = vmul.f32 %v828_v52, %v813_v62  ;;  %v815_v0 = vpop.f32.mrb[1].mxu1 }
 0x199   : > { %845 = vst [vmem:[%s263_s27 + $0x8] sm:$0xff] %v841_v61  ;;  %v833_v1 = vmul.f32 %v828_v52, %v815_v0  ;;  %v817_v2 = vpop.f32.mrb[2].mxu1 }
 0x19a   : > { %v842_v3 = vadd.f32 %v838_v54, %v832_v63  ;;  %v818_v4 = vpop.f32.mrb[3].mxu1 }
 0x19b   : > { %v843_v5 = vadd.f32 %v838_v54, %v833_v1 }
 0x19c   : > { %846 = vst [vmem:[%s263_s27 + $0x10] sm:$0xff] %v842_v3 }
 0x19d   : > { %847 = vst [vmem:[%s263_s27 + $0x18] sm:$0xff] %v843_v5 }
 0x19e PF: > { %s15_s18 = sadd.s32 1, %s1012_s18  }
 0x19f   : > { %p12_p6 = scmp.ge.s32.totalorder %s15_s18, 7  }
 0x1a1   :  { %14 = sbr.rel (!%p12_p6) target bundleno = 1 (0x1), region = 77 }

</bundles_post_ra>
